<compile_context>
chip_gen: v6e
topology: v6e:2x2x1
jax: 0.10.0
libtpu: 0.0.40
codegen_flags: <defaults>
</compile_context>

<pallas_src>
import functools

import jax
import jax.numpy as jnp
from jax.experimental import pallas as pl
from jax.experimental.pallas import tpu as pltpu


# dot_general dimension numbers contracting the trailing dims: (m,k)x(n,k)->(m,n)
_NT = (((1,), (1,)), ((), ()))


def _activation(name):
    if name == "relu":
        return lambda x: jnp.maximum(x, 0.0)
    elif name == "elu":
        # Safe dead branch: exp(min(x, 0)) avoids inf in the unselected lane.
        return lambda x: jnp.where(x > 0, x, jnp.exp(jnp.minimum(x, 0.0)) - 1.0)
    else:  # tanh (PyTorch default branch)
        return jnp.tanh


def _round_up(x, m):
    return ((x + m - 1) // m) * m


def qnet_kernel(
    v_ref,       # (TILE_B, vdim)  f32/bf16  V block (streams, untransposed)
    il_ref,      # (1, TILE_B)     int32     ilist block (streams)
    w1_ref,      # (hdim, vdim)    f32       Linear1 weight (out, in)   (resident)
    w2_ref,      # (hdim, hdim)    f32                                  (resident)
    w3_ref,      # (hdim, hdim)    f32                                  (resident)
    vec_ref,     # (hdim, 9)       f32  cols [b1 g1 be1 b2 g2 be2 b3 g3 be3] (res.)
    whead_ref,   # (vdim, hdim)    f32  self.W[:, :, 0]                 (resident)
    bm_ref,      # (vdim, 2)       f32  col0 = self.b[:,0,0], col1 = marginals
    o_ref,       # (1, TILE_B)     f32  lane-dense output
    *, act, inv_temp,
):
    act_fn = _activation(act)

    v = v_ref[...]
    if v.dtype != jnp.float32:
        v = v.astype(jnp.float32)          # streamed bf16 -> f32 (VPU unpack)
    tile_b, vdim = v.shape

    def ln_act(h, j):
        # h = W @ x  (hdim, TILE_B); add bias, LayerNorm over features, activate.
        b = vec_ref[:, 3 * j + 0: 3 * j + 1]          # (hdim, 1) lane-broadcast
        g = vec_ref[:, 3 * j + 1: 3 * j + 2]
        be = vec_ref[:, 3 * j + 2: 3 * j + 3]
        h = h + b
        mu = jnp.mean(h, axis=0, keepdims=True)       # (1, TILE_B) sublane reduce
        hc = h - mu                                   # hoisted, reused twice
        var = jnp.mean(hc * hc, axis=0, keepdims=True)
        return act_fn(hc * jax.lax.rsqrt(var + 1e-5) * g + be)

    # Layer 1 contracts over vdim directly on the (TILE_B, vdim) block (NT
    # matmul) -> batch lands on lanes: h is (hdim, TILE_B).
    h = jax.lax.dot_general(w1_ref[...], v, _NT,
                            preferred_element_type=jnp.float32)
    h = ln_act(h, 0)
    h = jnp.dot(w2_ref[...], h, preferred_element_type=jnp.float32)
    h = ln_act(h, 1)
    h = jnp.dot(w3_ref[...], h, preferred_element_type=jnp.float32)
    h = ln_act(h, 2)

    # In-kernel head selection (replaces the wrapper gather):
    #   y[v, n] = W[v, :] . h[:, n] + b[v]   for every candidate row v,
    #   x[n]    = y[ilist[n], n]             picked with a one-hot mask.
    ids = il_ref[...]                                              # (1, TILE_B)
    row = jax.lax.broadcasted_iota(jnp.int32, (vdim, tile_b), 0)
    onehot = (row == ids).astype(jnp.float32)                      # (vdim, TILE_B)

    y = jnp.dot(whead_ref[...], h, preferred_element_type=jnp.float32)
    y = y + bm_ref[:, 0:1]                                         # (vdim, TILE_B)
    x = jnp.sum(onehot * y, axis=0, keepdims=True)                 # (1, TILE_B)
    marg = jnp.sum(onehot * bm_ref[:, 1:2], axis=0, keepdims=True)

    # where(V.abs().sum(-1) == 0, marginals[ilist], x): the nonnegative row-sum
    # comes out lane-dense via a tiny MXU matmul (no transpose of V needed).
    ones8 = jnp.ones((8, vdim), jnp.float32)
    abs_sum = jax.lax.dot_general(ones8, jnp.abs(v), _NT,
                                  preferred_element_type=jnp.float32)[0:1, :]
    x = jnp.where(abs_sum == 0.0, marg, x)

    o_ref[...] = x * inv_temp


def init_qnet_params(key, vdim, hdim):
    """Deterministic synthetic parameter init (shapes match the nn.Module)."""
    ks = jax.random.split(key, 8)
    s1 = 1.0 / jnp.sqrt(vdim)
    s2 = 1.0 / jnp.sqrt(hdim)
    return {
        # Linear weights stored as (in, out) so the reference does x @ W + b.
        "w1": jax.random.uniform(ks[0], (vdim, hdim), jnp.float32, -s1, s1),
        "b1": jax.random.uniform(ks[1], (hdim,), jnp.float32, -s1, s1),
        "g1": jnp.ones((hdim,), jnp.float32),
        "be1": jnp.zeros((hdim,), jnp.float32),
        "w2": jax.random.uniform(ks[2], (hdim, hdim), jnp.float32, -s2, s2),
        "b2": jax.random.uniform(ks[3], (hdim,), jnp.float32, -s2, s2),
        "g2": jnp.ones((hdim,), jnp.float32),
        "be2": jnp.zeros((hdim,), jnp.float32),
        "w3": jax.random.uniform(ks[4], (hdim, hdim), jnp.float32, -s2, s2),
        "b3": jax.random.uniform(ks[5], (hdim,), jnp.float32, -s2, s2),
        "g3": jnp.ones((hdim,), jnp.float32),
        "be3": jnp.zeros((hdim,), jnp.float32),
        "W": 0.01 * jax.random.normal(ks[6], (vdim, hdim, 1), jnp.float32),
        "b": jnp.zeros((vdim, 1, 1), jnp.float32),
        "marginals": jnp.zeros((vdim,), jnp.float32),
    }


def qnet_forward(params, V, ilist, temp=1.0, act="relu", block_b=2048):
    """Pallas forward.  V: (B, vdim) f32/bf16, ilist: (B,) int -> (B,) f32."""
    assert block_b % 128 == 0, "batch tile must be lane-aligned (multiple of 128)"
    B, vdim = V.shape
    hdim = params["w1"].shape[1]

    # Batch tiling: full-width single block for B <= 128; otherwise at least
    # two lane-aligned blocks (so v7x's two TensorCores both get work), capped
    # at block_b.  Ragged tails are handled by Pallas block masking.
    if B <= 128:
        tile_b = B
    else:
        tile_b = min(block_b, _round_up(pl.cdiv(B, 2), 128))
    n_blocks = pl.cdiv(B, tile_b)

    # Parameter-only packing (batch independent, tiny).
    w1 = params["w1"].T                                   # (hdim, vdim)
    w2 = params["w2"].T                                   # (hdim, hdim)
    w3 = params["w3"].T                                   # (hdim, hdim)
    vec = jnp.stack(
        [params["b1"], params["g1"], params["be1"],
         params["b2"], params["g2"], params["be2"],
         params["b3"], params["g3"], params["be3"]], axis=1)      # (hdim, 9)
    whead = params["W"][:, :, 0]                          # (vdim, hdim)
    bm = jnp.stack([params["b"][:, 0, 0], params["marginals"]], axis=1)  # (vdim,2)

    il2d = ilist.reshape(1, B).astype(jnp.int32)

    # Derived VMEM budget: double-buffered streams + resident weights + temps.
    v_itemsize = jnp.dtype(V.dtype).itemsize
    streamed = tile_b * (vdim * v_itemsize + 4 + 4)
    resident = 4 * (hdim * vdim + 2 * hdim * hdim + 9 * hdim
                    + vdim * hdim + 2 * vdim)
    temps = 4 * tile_b * (6 * hdim + 4 * vdim)
    vmem_bytes = 2 * (streamed + resident) + temps + (2 << 20)
    vmem_bytes = int(min(max(vmem_bytes, 8 << 20), 48 << 20))

    cost = pl.CostEstimate(
        flops=2 * B * (2 * vdim * hdim + 2 * hdim * hdim) + 12 * B * hdim,
        transcendentals=3 * B * hdim,
        bytes_accessed=B * (vdim * v_itemsize + 8) + resident)

    out = pl.pallas_call(
        functools.partial(qnet_kernel, act=act, inv_temp=1.0 / float(temp)),
        grid=(n_blocks,),
        in_specs=[
            pl.BlockSpec((tile_b, vdim), lambda i: (i, 0)),   # V        (streams)
            pl.BlockSpec((1, tile_b), lambda i: (0, i)),      # ilist    (streams)
            pl.BlockSpec((hdim, vdim), lambda i: (0, 0)),     # w1       (resident)
            pl.BlockSpec((hdim, hdim), lambda i: (0, 0)),     # w2       (resident)
            pl.BlockSpec((hdim, hdim), lambda i: (0, 0)),     # w3       (resident)
            pl.BlockSpec((hdim, 9), lambda i: (0, 0)),        # bias/LN  (resident)
            pl.BlockSpec((vdim, hdim), lambda i: (0, 0)),     # head W   (resident)
            pl.BlockSpec((vdim, 2), lambda i: (0, 0)),        # b/marg   (resident)
        ],
        out_specs=pl.BlockSpec((1, tile_b), lambda i: (0, i)),
        out_shape=jax.ShapeDtypeStruct((1, B), jnp.float32),
        compiler_params=pltpu.CompilerParams(
            dimension_semantics=("parallel",),   # batch blocks over v7x's 2 TCs
            vmem_limit_bytes=vmem_bytes),
        cost_estimate=cost,
    )(V, il2d, w1, w2, w3, vec, whead, bm)

    return out[0]                                          # (B,) matches .squeeze()


def qnet_forward_ref(params, V, ilist, temp=1.0, act="relu"):
    """Pure-JAX reference (mirrors the PyTorch module) for correctness checks."""
    act_fn = _activation(act)
    h = V.astype(jnp.float32)
    for i in ("1", "2", "3"):
        h = h @ params["w" + i] + params["b" + i]
        mu = jnp.mean(h, axis=-1, keepdims=True)
        var = jnp.mean(jnp.square(h - mu), axis=-1, keepdims=True)
        h = (h - mu) * jax.lax.rsqrt(var + 1e-5) * params["g" + i] + params["be" + i]
        h = act_fn(h)
    x = jnp.sum(h * params["W"][ilist, :, 0], axis=-1) + params["b"][ilist, 0, 0]
    x = jnp.where(jnp.sum(jnp.abs(V.astype(jnp.float32)), axis=-1) == 0.0,
                  params["marginals"][ilist], x)
    return x / temp


if __name__ == "__main__":
    B, vdim, hdim = 8, 16, 32
    act = "relu"

    key = jax.random.PRNGKey(0)
    k_param, k_v, k_i = jax.random.split(key, 3)

    params = init_qnet_params(k_param, vdim, hdim)

    V = jax.random.normal(k_v, (B, vdim), jnp.float32)
    V = V.at[0].set(0.0)  # exercise the zero-row -> marginals branch
    ilist = jax.random.randint(k_i, (B,), 0, vdim)

    # f32 path, single block (B <= 128).
    out = jax.block_until_ready(qnet_forward(params, V, ilist, temp=2.0, act=act))
    ref = qnet_forward_ref(params, V, ilist, temp=2.0, act=act)
    assert out.shape == (B,)
    assert jnp.allclose(out, ref, atol=1e-5, rtol=1e-5), (out, ref)

    # bf16-streamed V (halves the dominant HBM stream on v5e/v6e) — looser tol,
    # compared against the reference on the same bf16-rounded inputs.
    V_bf16 = V.astype(jnp.bfloat16)
    out_bf = jax.block_until_ready(
        qnet_forward(params, V_bf16, ilist, temp=2.0, act=act))
    ref_bf = qnet_forward_ref(params, V_bf16, ilist, temp=2.0, act=act)
    assert jnp.allclose(out_bf, ref_bf, atol=5e-3, rtol=5e-2), (out_bf, ref_bf)

    # Multi-block path with a ragged tail (exercises streaming, resident
    # weights, in-kernel head selection and Pallas edge-block masking).
    B2 = 300
    V2 = jax.random.normal(jax.random.PRNGKey(1), (B2, vdim), jnp.float32)
    V2 = V2.at[7].set(0.0)
    ilist2 = jax.random.randint(jax.random.PRNGKey(2), (B2,), 0, vdim)
    out2 = jax.block_until_ready(
        qnet_forward(params, V2, ilist2, temp=1.0, act=act, block_b=128))
    ref2 = qnet_forward_ref(params, V2, ilist2, temp=1.0, act=act)
    assert out2.shape == (B2,)
    assert jnp.allclose(out2, ref2, atol=1e-5, rtol=1e-5)

    # ELU branch (exercises the exp-based dead branch).
    out3 = jax.block_until_ready(qnet_forward(params, V, ilist, temp=1.0, act="elu"))
    ref3 = qnet_forward_ref(params, V, ilist, temp=1.0, act="elu")
    assert jnp.allclose(out3, ref3, atol=1e-5, rtol=1e-5)

    print("KERNEL_OK")
</pallas_src>

<mosaic_0001>
module attributes {stable_mosaic.version = 11 : i64} {
  func.func @qnet_kernel(%arg0: i32, %arg1: memref<8x16xf32, #tpu.memory_space<vmem>>, %arg2: memref<1x8xi32, #tpu.memory_space<vmem>>, %arg3: memref<32x16xf32, #tpu.memory_space<vmem>>, %arg4: memref<32x32xf32, #tpu.memory_space<vmem>>, %arg5: memref<32x32xf32, #tpu.memory_space<vmem>>, %arg6: memref<32x9xf32, #tpu.memory_space<vmem>>, %arg7: memref<16x32xf32, #tpu.memory_space<vmem>>, %arg8: memref<16x2xf32, #tpu.memory_space<vmem>>, %arg9: memref<1x8xf32, #tpu.memory_space<vmem>>) attributes {dimension_semantics = [#tpu.dimension_semantics<parallel>], iteration_bounds = array<i64: 1>, scalar_prefetch = 0 : i64, scratch_operands = 0 : i64, tpu.core_type = #tpu.core_type<tc>, window_params = [{transform_indices = @transform_0, window_bounds = array<i64: 8, 16>}, {transform_indices = @transform_1, window_bounds = array<i64: 1, 8>}, {pipeline_mode = #tpu.pipeline_mode<synchronous>, transform_indices = @transform_2, window_bounds = array<i64: 32, 16>}, {pipeline_mode = #tpu.pipeline_mode<synchronous>, transform_indices = @transform_3, window_bounds = array<i64: 32, 32>}, {pipeline_mode = #tpu.pipeline_mode<synchronous>, transform_indices = @transform_4, window_bounds = array<i64: 32, 32>}, {pipeline_mode = #tpu.pipeline_mode<synchronous>, transform_indices = @transform_5, window_bounds = array<i64: 32, 9>}, {pipeline_mode = #tpu.pipeline_mode<synchronous>, transform_indices = @transform_6, window_bounds = array<i64: 16, 32>}, {pipeline_mode = #tpu.pipeline_mode<synchronous>, transform_indices = @transform_7, window_bounds = array<i64: 16, 2>}, {transform_indices = @transform_8, window_bounds = array<i64: 1, 8>}]} {
    %c0 = arith.constant 0 : index
    %c0_0 = arith.constant 0 : index
    %0 = vector.load %arg1[%c0, %c0_0] : memref<8x16xf32, #tpu.memory_space<vmem>>, vector<8x16xf32>
    %c0_1 = arith.constant 0 : index
    %c0_2 = arith.constant 0 : index
    %1 = vector.load %arg3[%c0_1, %c0_2] : memref<32x16xf32, #tpu.memory_space<vmem>>, vector<32x16xf32>
    %cst = arith.constant dense<0.000000e+00> : vector<32x8xf32>
    %2 = tpu.matmul %1, %0, %cst {dimension_numbers = #tpu.dot_dimension_numbers<[1], [1], [0], [0], [0, 0, 1, 0], [], []>} : vector<32x16xf32>, vector<8x16xf32>, vector<32x8xf32> -> vector<32x8xf32>
    %c0_3 = arith.constant 0 : index
    %c0_4 = arith.constant 0 : index
    %3 = vector.load %arg6[%c0_3, %c0_4] : memref<32x9xf32, #tpu.memory_space<vmem>>, vector<32x1xf32>
    %c0_5 = arith.constant 0 : index
    %c1 = arith.constant 1 : index
    %4 = vector.load %arg6[%c0_5, %c1] : memref<32x9xf32, #tpu.memory_space<vmem>>, vector<32x1xf32>
    %c0_6 = arith.constant 0 : index
    %c2 = arith.constant 2 : index
    %5 = vector.load %arg6[%c0_6, %c2] : memref<32x9xf32, #tpu.memory_space<vmem>>, vector<32x1xf32>
    %6 = vector.broadcast %3 : vector<32x1xf32> to vector<32x8xf32>
    %7 = arith.addf %2, %6 : vector<32x8xf32>
    %cst_7 = arith.constant dense<0.000000e+00> : vector<8xf32>
    %8 = vector.multi_reduction <add>, %7, %cst_7 [0] : vector<32x8xf32> to vector<8xf32>
    %9 = vector.shape_cast %8 : vector<8xf32> to vector<1x8xf32>
    %cst_8 = arith.constant 3.200000e+01 : f32
    %10 = vector.broadcast %cst_8 : f32 to vector<1x8xf32>
    %11 = arith.divf %9, %10 : vector<1x8xf32>
    %12 = vector.broadcast %11 : vector<1x8xf32> to vector<32x8xf32>
    %13 = arith.subf %7, %12 : vector<32x8xf32>
    %14 = arith.mulf %13, %13 : vector<32x8xf32>
    %cst_9 = arith.constant dense<0.000000e+00> : vector<8xf32>
    %15 = vector.multi_reduction <add>, %14, %cst_9 [0] : vector<32x8xf32> to vector<8xf32>
    %16 = vector.shape_cast %15 : vector<8xf32> to vector<1x8xf32>
    %cst_10 = arith.constant 3.200000e+01 : f32
    %17 = vector.broadcast %cst_10 : f32 to vector<1x8xf32>
    %18 = arith.divf %16, %17 : vector<1x8xf32>
    %cst_11 = arith.constant 9.99999974E-6 : f32
    %19 = vector.broadcast %cst_11 : f32 to vector<1x8xf32>
    %20 = arith.addf %18, %19 : vector<1x8xf32>
    %21 = math.rsqrt %20 : vector<1x8xf32>
    %22 = vector.broadcast %21 : vector<1x8xf32> to vector<32x8xf32>
    %23 = arith.mulf %13, %22 : vector<32x8xf32>
    %24 = vector.broadcast %4 : vector<32x1xf32> to vector<32x8xf32>
    %25 = arith.mulf %23, %24 : vector<32x8xf32>
    %26 = vector.broadcast %5 : vector<32x1xf32> to vector<32x8xf32>
    %27 = arith.addf %25, %26 : vector<32x8xf32>
    %cst_12 = arith.constant 0.000000e+00 : f32
    %28 = vector.broadcast %cst_12 : f32 to vector<32x8xf32>
    %29 = arith.maximumf %27, %28 : vector<32x8xf32>
    %c0_13 = arith.constant 0 : index
    %c0_14 = arith.constant 0 : index
    %30 = vector.load %arg4[%c0_13, %c0_14] : memref<32x32xf32, #tpu.memory_space<vmem>>, vector<32x32xf32>
    %cst_15 = arith.constant dense<0.000000e+00> : vector<32x8xf32>
    %31 = tpu.matmul %30, %29, %cst_15 {dimension_numbers = #tpu.dot_dimension_numbers<[1], [0], [0], [1], [0, 0, 1, 1], [], []>} : vector<32x32xf32>, vector<32x8xf32>, vector<32x8xf32> -> vector<32x8xf32>
    %c0_16 = arith.constant 0 : index
    %c3 = arith.constant 3 : index
    %32 = vector.load %arg6[%c0_16, %c3] : memref<32x9xf32, #tpu.memory_space<vmem>>, vector<32x1xf32>
    %c0_17 = arith.constant 0 : index
    %c4 = arith.constant 4 : index
    %33 = vector.load %arg6[%c0_17, %c4] : memref<32x9xf32, #tpu.memory_space<vmem>>, vector<32x1xf32>
    %c0_18 = arith.constant 0 : index
    %c5 = arith.constant 5 : index
    %34 = vector.load %arg6[%c0_18, %c5] : memref<32x9xf32, #tpu.memory_space<vmem>>, vector<32x1xf32>
    %35 = vector.broadcast %32 : vector<32x1xf32> to vector<32x8xf32>
    %36 = arith.addf %31, %35 : vector<32x8xf32>
    %cst_19 = arith.constant dense<0.000000e+00> : vector<8xf32>
    %37 = vector.multi_reduction <add>, %36, %cst_19 [0] : vector<32x8xf32> to vector<8xf32>
    %38 = vector.shape_cast %37 : vector<8xf32> to vector<1x8xf32>
    %cst_20 = arith.constant 3.200000e+01 : f32
    %39 = vector.broadcast %cst_20 : f32 to vector<1x8xf32>
    %40 = arith.divf %38, %39 : vector<1x8xf32>
    %41 = vector.broadcast %40 : vector<1x8xf32> to vector<32x8xf32>
    %42 = arith.subf %36, %41 : vector<32x8xf32>
    %43 = arith.mulf %42, %42 : vector<32x8xf32>
    %cst_21 = arith.constant dense<0.000000e+00> : vector<8xf32>
    %44 = vector.multi_reduction <add>, %43, %cst_21 [0] : vector<32x8xf32> to vector<8xf32>
    %45 = vector.shape_cast %44 : vector<8xf32> to vector<1x8xf32>
    %cst_22 = arith.constant 3.200000e+01 : f32
    %46 = vector.broadcast %cst_22 : f32 to vector<1x8xf32>
    %47 = arith.divf %45, %46 : vector<1x8xf32>
    %cst_23 = arith.constant 9.99999974E-6 : f32
    %48 = vector.broadcast %cst_23 : f32 to vector<1x8xf32>
    %49 = arith.addf %47, %48 : vector<1x8xf32>
    %50 = math.rsqrt %49 : vector<1x8xf32>
    %51 = vector.broadcast %50 : vector<1x8xf32> to vector<32x8xf32>
    %52 = arith.mulf %42, %51 : vector<32x8xf32>
    %53 = vector.broadcast %33 : vector<32x1xf32> to vector<32x8xf32>
    %54 = arith.mulf %52, %53 : vector<32x8xf32>
    %55 = vector.broadcast %34 : vector<32x1xf32> to vector<32x8xf32>
    %56 = arith.addf %54, %55 : vector<32x8xf32>
    %cst_24 = arith.constant 0.000000e+00 : f32
    %57 = vector.broadcast %cst_24 : f32 to vector<32x8xf32>
    %58 = arith.maximumf %56, %57 : vector<32x8xf32>
    %c0_25 = arith.constant 0 : index
    %c0_26 = arith.constant 0 : index
    %59 = vector.load %arg5[%c0_25, %c0_26] : memref<32x32xf32, #tpu.memory_space<vmem>>, vector<32x32xf32>
    %cst_27 = arith.constant dense<0.000000e+00> : vector<32x8xf32>
    %60 = tpu.matmul %59, %58, %cst_27 {dimension_numbers = #tpu.dot_dimension_numbers<[1], [0], [0], [1], [0, 0, 1, 1], [], []>} : vector<32x32xf32>, vector<32x8xf32>, vector<32x8xf32> -> vector<32x8xf32>
    %c0_28 = arith.constant 0 : index
    %c6 = arith.constant 6 : index
    %61 = vector.load %arg6[%c0_28, %c6] : memref<32x9xf32, #tpu.memory_space<vmem>>, vector<32x1xf32>
    %c0_29 = arith.constant 0 : index
    %c7 = arith.constant 7 : index
    %62 = vector.load %arg6[%c0_29, %c7] : memref<32x9xf32, #tpu.memory_space<vmem>>, vector<32x1xf32>
    %c0_30 = arith.constant 0 : index
    %c8 = arith.constant 8 : index
    %63 = vector.load %arg6[%c0_30, %c8] : memref<32x9xf32, #tpu.memory_space<vmem>>, vector<32x1xf32>
    %64 = vector.broadcast %61 : vector<32x1xf32> to vector<32x8xf32>
    %65 = arith.addf %60, %64 : vector<32x8xf32>
    %cst_31 = arith.constant dense<0.000000e+00> : vector<8xf32>
    %66 = vector.multi_reduction <add>, %65, %cst_31 [0] : vector<32x8xf32> to vector<8xf32>
    %67 = vector.shape_cast %66 : vector<8xf32> to vector<1x8xf32>
    %cst_32 = arith.constant 3.200000e+01 : f32
    %68 = vector.broadcast %cst_32 : f32 to vector<1x8xf32>
    %69 = arith.divf %67, %68 : vector<1x8xf32>
    %70 = vector.broadcast %69 : vector<1x8xf32> to vector<32x8xf32>
    %71 = arith.subf %65, %70 : vector<32x8xf32>
    %72 = arith.mulf %71, %71 : vector<32x8xf32>
    %cst_33 = arith.constant dense<0.000000e+00> : vector<8xf32>
    %73 = vector.multi_reduction <add>, %72, %cst_33 [0] : vector<32x8xf32> to vector<8xf32>
    %74 = vector.shape_cast %73 : vector<8xf32> to vector<1x8xf32>
    %cst_34 = arith.constant 3.200000e+01 : f32
    %75 = vector.broadcast %cst_34 : f32 to vector<1x8xf32>
    %76 = arith.divf %74, %75 : vector<1x8xf32>
    %cst_35 = arith.constant 9.99999974E-6 : f32
    %77 = vector.broadcast %cst_35 : f32 to vector<1x8xf32>
    %78 = arith.addf %76, %77 : vector<1x8xf32>
    %79 = math.rsqrt %78 : vector<1x8xf32>
    %80 = vector.broadcast %79 : vector<1x8xf32> to vector<32x8xf32>
    %81 = arith.mulf %71, %80 : vector<32x8xf32>
    %82 = vector.broadcast %62 : vector<32x1xf32> to vector<32x8xf32>
    %83 = arith.mulf %81, %82 : vector<32x8xf32>
    %84 = vector.broadcast %63 : vector<32x1xf32> to vector<32x8xf32>
    %85 = arith.addf %83, %84 : vector<32x8xf32>
    %cst_36 = arith.constant 0.000000e+00 : f32
    %86 = vector.broadcast %cst_36 : f32 to vector<32x8xf32>
    %87 = arith.maximumf %85, %86 : vector<32x8xf32>
    %c0_37 = arith.constant 0 : index
    %c0_38 = arith.constant 0 : index
    %88 = vector.load %arg2[%c0_37, %c0_38] : memref<1x8xi32, #tpu.memory_space<vmem>>, vector<1x8xi32>
    %89 = tpu.iota {dimensions = array<i32: 0>} : vector<16x8xi32>
    %90 = vector.broadcast %88 : vector<1x8xi32> to vector<16x8xi32>
    %91 = arith.cmpi eq, %89, %90 : vector<16x8xi32>
    %92 = arith.extui %91 : vector<16x8xi1> to vector<16x8xi32>
    %93 = arith.sitofp %92 : vector<16x8xi32> to vector<16x8xf32>
    %c0_39 = arith.constant 0 : index
    %c0_40 = arith.constant 0 : index
    %94 = vector.load %arg7[%c0_39, %c0_40] : memref<16x32xf32, #tpu.memory_space<vmem>>, vector<16x32xf32>
    %cst_41 = arith.constant dense<0.000000e+00> : vector<16x8xf32>
    %95 = tpu.matmul %94, %87, %cst_41 {dimension_numbers = #tpu.dot_dimension_numbers<[1], [0], [0], [1], [0, 0, 1, 1], [], []>} : vector<16x32xf32>, vector<32x8xf32>, vector<16x8xf32> -> vector<16x8xf32>
    %c0_42 = arith.constant 0 : index
    %c0_43 = arith.constant 0 : index
    %96 = vector.load %arg8[%c0_42, %c0_43] : memref<16x2xf32, #tpu.memory_space<vmem>>, vector<16x1xf32>
    %97 = vector.broadcast %96 : vector<16x1xf32> to vector<16x8xf32>
    %98 = arith.addf %95, %97 : vector<16x8xf32>
    %99 = arith.mulf %93, %98 : vector<16x8xf32>
    %cst_44 = arith.constant dense<0.000000e+00> : vector<8xf32>
    %100 = vector.multi_reduction <add>, %99, %cst_44 [0] : vector<16x8xf32> to vector<8xf32>
    %101 = vector.shape_cast %100 : vector<8xf32> to vector<1x8xf32>
    %c0_45 = arith.constant 0 : index
    %c1_46 = arith.constant 1 : index
    %102 = vector.load %arg8[%c0_45, %c1_46] : memref<16x2xf32, #tpu.memory_space<vmem>>, vector<16x1xf32>
    %103 = vector.broadcast %102 : vector<16x1xf32> to vector<16x8xf32>
    %104 = arith.mulf %93, %103 : vector<16x8xf32>
    %cst_47 = arith.constant dense<0.000000e+00> : vector<8xf32>
    %105 = vector.multi_reduction <add>, %104, %cst_47 [0] : vector<16x8xf32> to vector<8xf32>
    %106 = vector.shape_cast %105 : vector<8xf32> to vector<1x8xf32>
    %cst_48 = arith.constant 1.000000e+00 : f32
    %107 = vector.broadcast %cst_48 : f32 to vector<8x16xf32>
    %108 = math.absf %0 : vector<8x16xf32>
    %cst_49 = arith.constant dense<0.000000e+00> : vector<8x8xf32>
    %109 = tpu.matmul %107, %108, %cst_49 {dimension_numbers = #tpu.dot_dimension_numbers<[1], [1], [0], [0], [0, 0, 1, 0], [], []>} : vector<8x16xf32>, vector<8x16xf32>, vector<8x8xf32> -> vector<8x8xf32>
    %110 = vector.extract_strided_slice %109 {offsets = [0, 0], sizes = [1, 8], strides = [1, 1]} : vector<8x8xf32> to vector<1x8xf32>
    %cst_50 = arith.constant 0.000000e+00 : f32
    %111 = vector.broadcast %cst_50 : f32 to vector<1x8xf32>
    %112 = arith.cmpf oeq, %110, %111 : vector<1x8xf32>
    %113 = arith.select %112, %106, %101 : vector<1x8xi1>, vector<1x8xf32>
    %cst_51 = arith.constant 5.000000e-01 : f32
    %114 = vector.broadcast %cst_51 : f32 to vector<1x8xf32>
    %115 = arith.mulf %113, %114 : vector<1x8xf32>
    %c0_52 = arith.constant 0 : index
    %c0_53 = arith.constant 0 : index
    %116 = vector.load %arg9[%c0_52, %c0_53] : memref<1x8xf32, #tpu.memory_space<vmem>>, vector<1x8xf32>
    tpu.vector_store %arg9[%c0_52, %c0_53], %115 {strides = array<i32>} : memref<1x8xf32, #tpu.memory_space<vmem>>, vector<1x8xf32>,
    return
  }
  func.func @transform_0(%arg0: i32) -> (i32, i32) {
    %c0_i32 = arith.constant 0 : i32
    %c0_i32_0 = arith.constant 0 : i32
    return %arg0, %c0_i32 : i32, i32
  }
  func.func @transform_1(%arg0: i32) -> (i32, i32) {
    %c0_i32 = arith.constant 0 : i32
    %c0_i32_0 = arith.constant 0 : i32
    return %c0_i32, %arg0 : i32, i32
  }
  func.func @transform_2(%arg0: i32) -> (i32, i32) {
    %c0_i32 = arith.constant 0 : i32
    %c0_i32_0 = arith.constant 0 : i32
    %c0_i32_1 = arith.constant 0 : i32
    return %c0_i32, %c0_i32_0 : i32, i32
  }
  func.func @transform_3(%arg0: i32) -> (i32, i32) {
    %c0_i32 = arith.constant 0 : i32
    %c0_i32_0 = arith.constant 0 : i32
    %c0_i32_1 = arith.constant 0 : i32
    return %c0_i32, %c0_i32_0 : i32, i32
  }
  func.func @transform_4(%arg0: i32) -> (i32, i32) {
    %c0_i32 = arith.constant 0 : i32
    %c0_i32_0 = arith.constant 0 : i32
    %c0_i32_1 = arith.constant 0 : i32
    return %c0_i32, %c0_i32_0 : i32, i32
  }
  func.func @transform_5(%arg0: i32) -> (i32, i32) {
    %c0_i32 = arith.constant 0 : i32
    %c0_i32_0 = arith.constant 0 : i32
    %c0_i32_1 = arith.constant 0 : i32
    return %c0_i32, %c0_i32_0 : i32, i32
  }
  func.func @transform_6(%arg0: i32) -> (i32, i32) {
    %c0_i32 = arith.constant 0 : i32
    %c0_i32_0 = arith.constant 0 : i32
    %c0_i32_1 = arith.constant 0 : i32
    return %c0_i32, %c0_i32_0 : i32, i32
  }
  func.func @transform_7(%arg0: i32) -> (i32, i32) {
    %c0_i32 = arith.constant 0 : i32
    %c0_i32_0 = arith.constant 0 : i32
    %c0_i32_1 = arith.constant 0 : i32
    return %c0_i32, %c0_i32_0 : i32, i32
  }
  func.func @transform_8(%arg0: i32) -> (i32, i32) {
    %c0_i32 = arith.constant 0 : i32
    %c0_i32_0 = arith.constant 0 : i32
    return %c0_i32, %arg0 : i32, i32
  }
}

</mosaic_0001>

<bundles_post_ra>
// kernel: tpu_custom_call.1
= control target key start
LH: loop header
LB: loop body
LE: loop exit
PB: predicated region body
PF: predicated region fallthrough
CT: control target
= control target key end

     0   :  { %13 = vsyncpa [#allocation3], 0  ;;  %s1325_s0 = inlined_call_operand.hbm [shape: f32[8,16], index: 0, kind: input, shape index: {}]   ;;  %s1326_s1 = inlined_call_operand.vmem [shape: s32[1,8], index: 1, kind: input, shape index: {}]   ;;  %s1327_s2 = inlined_call_operand.vmem [shape: f32[32,16], index: 2, kind: input, shape index: {}]   ;;  %s1328_s3 = inlined_call_operand.vmem [shape: f32[32,32], index: 3, kind: input, shape index: {}]   ;;  %s1329_s4 = inlined_call_operand.vmem [shape: f32[32,32], index: 4, kind: input, shape index: {}]   ;;  %s1330_s5 = inlined_call_operand.vmem [shape: f32[32,9], index: 5, kind: input, shape index: {}]   ;;  %s1331_s6 = inlined_call_operand.vmem [shape: f32[16,32], index: 6, kind: input, shape index: {}]   ;;  %s1332_s7 = inlined_call_operand.vmem [shape: f32[16,2], index: 7, kind: input, shape index: {}]   ;;  %s1333_s8 = inlined_call_operand.hbm [shape: f32[1,8], index: 8, kind: output, shape index: {}]  }
   0x1   :  { %14 = vsyncpa [#allocation4], 0  ;;  %s1091_s27 = smov [#allocation2]  }
   0x2   :  { %s21_s28 = sshll.u32 %s1091_s27, 4  ;;  %s22_s28 = int_to_ptr.vmem [resolvable:$true] %s21_s28 }
   0x3   :  { %s1055_s29 = scalar_lea.vmem %s22_s28, 128  ;;  %p1060_p1 = scmp.lt.s32.totalorder %s22_s28, %s22_s28 }
   0x4   :  { %p1056_p0 = scmp.ne.s32.totalorder %s22_s28, %s1055_s29  ;;  %p1061_p2 = scmp.lt.s32.totalorder %s1055_s29, %s1055_s29 }
   0x6   :  { %p1062_p3 = por %p1061_p2, %p1060_p1 }
   0x8   :  { %p1063_p4 = pnand %p1062_p3, %p1056_p0 }
   0xa   :  { %1066 = shalt.err (!%p1063_p4)
}
   0xb   :  { %24 = dma.hbm_to_vmem [thread:$0]  %s1325_s0, 128, %s22_s28, [#allocation3]  }
   0xc   :  { %1087 = dma.done.wait [#allocation3], 128  }
   0xd   :  { %1088 = vsyncadd [#allocation3], 4294967168  ;;  %v1092_v0 = vmov 0   ;;  %vm71_vm0 = vcmask 130048   ;;  %v1155_v1 = vld [vmem:[#allocation2] sm:$0xff]  ;;  %v44_v4 = vld [vmem:[%s1327_s2 + $0x8] sm:$0xff] }
   0xe   :  { %1018 = vset.pattern.permute.xlu0 %v1092_v0  ;;  %1019 = vset.pattern.permute.xlu1 %v1092_v0  ;;  %v43_v2 = vld [vmem:[%s1327_s2] sm:$0xff]  ;;  %v1177_v5 = vld [vmem:[%s1330_s5 + $0x10] sm:$0xff]  ;;  %v1186_v7 = vld [vmem:[%s1330_s5 + $0x8] sm:$0xff]  ;;  %v1093_v10 = vmov 1   ;;  %v1094_v11 = vmov 2   ;;  %vm280_vm1 = vcmask 261120  }
   0xf   :  { %952 = vmatprep.subr.msk.mxu0 %vm71_vm0, %v1155_v1  ;;  %954 = vmatprep.mubr.msk.f32.mxu0 %vm71_vm0, %v43_v2  ;;  %v1166_v3 = vld [vmem:[%s1330_s5] sm:$0xff]  ;;  %v45_v6 = vld [vmem:[%s1327_s2 + $0x10] sm:$0xff]  ;;  %v1191_v8 = vld [vmem:[%s1330_s5 + $0x18] sm:$0xff]  ;;  %v1095_v13 = vmov 3   ;;  %v1096_v14 = vmov 4   ;;  %v1097_v15 = vmov 5  }
  0x10   :  { %953 = vmatpush3.xpose.msk.msra.mxu0 %vm71_vm0, %v1155_v1  ;;  %53 = vperm.xlu0 %1018, %v1166_v3   ;;  %v46_v9 = vld [vmem:[%s1327_s2 + $0x18] sm:$0xff]  ;;  %v260_v12 = vld [vmem:[%s1328_s3] sm:$0xff]  ;;  %vm172_vm2 = vcmask 64512   ;;  %vm1102_vm3 = vmmov 0   ;;  %vm886_vm7 = vcmask 57344  }
  0x11   :  { %63 = vperm.xlu1 %1019, %v1177_v5   ;;  %968 = vmatprep.mubr.msk.f32.mxu1 %vm280_vm1, %v260_v12 }
  0x13   :  { %955 = vmatmul.mubr.msk.f32.vlgmr.msra.gmra.mxu0 %vm71_vm0, %v44_v4 }
  0x14   :  { %957 = vmatprep.mubr.msk.f32.mxu0 %vm71_vm0, %v45_v6  ;;  %58 = vperm.xlu0 %1018, %v1186_v7  }
  0x15   :  { %68 = vperm.xlu1 %1019, %v1191_v8  }
  0x17   :  { %958 = vmatmul.mubr.msk.f32.gmra.mxu0 %vm71_vm0, %v46_v9 }
  0x18   :  { %1020 = vset.pattern.permute.xlu0 %v1093_v10 }
  0x19   :  { %1021 = vset.pattern.permute.xlu1 %v1093_v10  ;;  %229 = vperm.xlu0 %1020, %v1191_v8  }
  0x1a   :  { %225 = vperm.xlu1 %1021, %v1177_v5  }
  0x1d   :  { %221 = vperm.xlu0 %1020, %v1186_v7  }
  0x1e   :  { %1022 = vset.pattern.permute.xlu1 %v1094_v11 }
  0x1f   :  { %249 = vperm.xlu1 %1022, %v1191_v8  }
  0x21   :  { %217 = vperm.xlu0 %1020, %v1166_v3  }
  0x23   :  { %245 = vperm.xlu1 %1022, %v1177_v5  }
  0x25   :  { %1023 = vset.pattern.permute.xlu0 %v1094_v11 }
  0x26   :  { %237 = vperm.xlu0 %1023, %v1166_v3  }
  0x27   :  { %241 = vperm.xlu1 %1022, %v1186_v7  }
  0x2a   :  { %1025 = vset.pattern.permute.xlu0 %v1095_v13 }
  0x2b   :  { %1024 = vset.pattern.permute.xlu1 %v1095_v13  ;;  %273 = vperm.xlu0 %1025, %v1177_v5  }
  0x2c   :  { %265 = vperm.xlu1 %1024, %v1166_v3  }
  0x2f   :  { %1027 = vset.pattern.permute.xlu0 %v1096_v14 }
  0x30   :  { %269 = vperm.xlu1 %1024, %v1186_v7   ;;  %429 = vperm.xlu0 %1027, %v1177_v5  }
  0x34   :  { %277 = vperm.xlu1 %1024, %v1191_v8   ;;  %1030 = vset.pattern.permute.xlu0 %v1097_v15 }
  0x35   :  { %449 = vperm.xlu0 %1030, %v1177_v5  }
  0x38   :  { %1026 = vset.pattern.permute.xlu1 %v1096_v14 }
  0x39   :  { %433 = vperm.xlu1 %1026, %v1191_v8   ;;  %441 = vperm.xlu0 %1030, %v1166_v3  }
  0x3d   :  { %1028 = vset.pattern.permute.xlu1 %v1097_v15 }
  0x3e   :  { %453 = vperm.xlu1 %1028, %v1191_v8  }
  0x42   :  { %1029 = vset.pattern.permute.xlu1 %v1096_v14 }
  0x43   :  { %425 = vperm.xlu1 %1029, %v1186_v7  }
  0x47   :  { %421 = vperm.xlu1 %1029, %v1166_v3  }
  0x4b   :  { %1031 = vset.pattern.permute.xlu1 %v1097_v15 }
  0x4c   :  { %445 = vperm.xlu1 %1031, %v1186_v7  }
  0x8b   :  { %v54_v16 = vpop.permute.xlu0 %53 }
  0x8c   :  { %v64_v17 = vpop.permute.xlu1 %63 }
  0x8f   :  { %v59_v18 = vpop.permute.xlu0 %58 }
  0x90   :  { %v69_v23 = vpop.permute.xlu1 %68 }
  0x94   :  { %v230_v6 = vpop.permute.xlu0 %229 }
  0x95   :  { %v226_v4 = vpop.permute.xlu1 %225 }
  0x98   :  { %v222_v11 = vpop.permute.xlu0 %221 }
  0x9a   :  { %v250_v9 = vpop.permute.xlu1 %249 }
  0x9e   :  { %v246_v13 = vpop.permute.xlu1 %245 }
  0xd3   :  { %v956_v19 = vpop.f32.mrf.mxu0 }
  0xd4   :  { %v159_v21 = vadd.f32 %v956_v19, %v59_v18  ;;  %v218_v18 = vpop.permute.xlu0 %217 }
  0xd5   :  { %v153_v20 = vpop.f32.mrf.mxu0 }
  0xd6   :  { %v154_v22 = vadd.f32 %v153_v20, %v54_v16  ;;  %v174_v27 = vsel %vm172_vm2, %v159_v21, 0.0 }
  0xd7   :  { %v959_v24 = vpop.f32.mrf.mxu0 }
  0xd8   :  { %v173_v25 = vsel %vm172_vm2, %v154_v22, 0.0  ;;  %v169_v28 = vadd.f32 %v959_v24, %v69_v23 }
  0xd9   :  { %v163_v26 = vpop.f32.mrf.mxu0  ;;  %v175_v30 = vadd.f32 %v174_v27, %v173_v25  ;;  %v242_v25 = vpop.permute.xlu1 %241 }
  0xda   :  { %v164_v29 = vadd.f32 %v163_v26, %v64_v17  ;;  %v178_v33 = vsel %vm172_vm2, %v169_v28, 0.0  ;;  %v238_v26 = vpop.permute.xlu0 %237 }
  0xdc   :  { %v176_v31 = vsel %vm172_vm2, %v164_v29, 0.0 }
  0xdd   :  { %v177_v32 = vadd.f32 %v176_v31, %v175_v30 }
  0xdf   :  { %v179_v34 = vadd.f32 %v178_v33, %v177_v32  ;;  %v261_v33 = vld [vmem:[%s1328_s3 + $0x8] sm:$0xff] }
  0xe1   :  { %v180_v35 = vrot.slane %v179_v34, 4 }
  0xe3   :  { %v181_v36 = vadd.f32 %v180_v35, %v179_v34  ;;  %v262_v34 = vld [vmem:[%s1328_s3 + $0x10] sm:$0xff]  ;;  %v263_v35 = vld [vmem:[%s1328_s3 + $0x18] sm:$0xff] }
  0xe5   :  { %v182_v37 = vrot.slane %v181_v36, 2 }
  0xe7   :  { %v183_v38 = vadd.f32 %v182_v37, %v181_v36  ;;  %v464_v36 = vld [vmem:[%s1329_s4] sm:$0xff]  ;;  %v1098_v37 = vmov 6  }
  0xe8   :  { %982 = vmatprep.mubr.msk.f32.mxu0 %vm280_vm1, %v464_v36  ;;  %1032 = vset.pattern.permute.xlu1 %v1098_v37 }
  0xe9   :  { %v184_v39 = vrot.slane %v183_v38, 1  ;;  %1033 = vset.pattern.permute.xlu0 %v1098_v37  ;;  %469 = vperm.xlu1 %1032, %v1166_v3  }
  0xea   :  { %473 = vperm.xlu0 %1033, %v1186_v7  }
  0xeb   :  { %v185_v40 = vadd.f32 %v184_v39, %v183_v38  ;;  %v1099_v38 = vmov 7   ;;  %v1100_v39 = vmov 8  }
  0xed   :  { %v187_v41 = vmul.f32 0.03125, %v185_v40  ;;  %477 = vperm.xlu1 %1032, %v1177_v5   ;;  %v266_v40 = vpop.permute.xlu1 %265 }
  0xee   :  { %1034 = vset.pattern.permute.xlu0 %v1099_v38 }
  0xef   :  { %v188_v42 = vsub.f32 %v154_v22, %v187_v41  ;;  %v189_v43 = vsub.f32 %v159_v21, %v187_v41  ;;  %v190_v44 = vsub.f32 %v164_v29, %v187_v41  ;;  %v191_v45 = vsub.f32 %v169_v28, %v187_v41  ;;  %636 = vperm.xlu0 %1034, %v1191_v8  }
  0xf1   :  { %v192_v46 = vmul.f32 %v188_v42, %v188_v42  ;;  %v193_v47 = vmul.f32 %v189_v43, %v189_v43  ;;  %v194_v48 = vmul.f32 %v190_v44, %v190_v44  ;;  %v195_v49 = vmul.f32 %v191_v45, %v191_v45  ;;  %481 = vperm.xlu1 %1032, %v1191_v8   ;;  %v270_v41 = vpop.permute.xlu1 %269 }
  0xf3   :  { %v196_v50 = vsel %vm172_vm2, %v192_v46, 0.0  ;;  %v197_v51 = vsel %vm172_vm2, %v193_v47, 0.0  ;;  %v199_v53 = vsel %vm172_vm2, %v194_v48, 0.0  ;;  %v201_v55 = vsel %vm172_vm2, %v195_v49, 0.0  ;;  %628 = vperm.xlu0 %1034, %v1186_v7   ;;  %v274_v47 = vpop.permute.xlu0 %273 }
  0xf4   :  { %v198_v52 = vadd.f32 %v197_v51, %v196_v50 }
  0xf5   :  { %1035 = vset.pattern.permute.xlu1 %v1099_v38  ;;  %v278_v48 = vpop.permute.xlu1 %277 }
  0xf6   :  { %v200_v54 = vadd.f32 %v199_v53, %v198_v52  ;;  %632 = vperm.xlu1 %1035, %v1177_v5  }
  0xf7   :  { %624 = vperm.xlu0 %1034, %v1166_v3  }
  0xf8   :  { %v202_v56 = vadd.f32 %v201_v55, %v200_v54 }
  0xfa   :  { %v203_v57 = vrot.slane %v202_v56, 4  ;;  %1036 = vset.pattern.permute.xlu1 %v1100_v39 }
  0xfb   :  { %1037 = vset.pattern.permute.xlu0 %v1100_v39  ;;  %656 = vperm.xlu1 %1036, %v1191_v8  }
  0xfc   :  { %v204_v58 = vadd.f32 %v203_v57, %v202_v56  ;;  %644 = vperm.xlu0 %1037, %v1166_v3  }
  0xfe   :  { %v205_v59 = vrot.slane %v204_v58, 2 }
  0xff   :  { %652 = vperm.xlu1 %1036, %v1177_v5  }
 0x100   :  { %v206_v60 = vadd.f32 %v205_v59, %v204_v58  ;;  %1039 = vset.pattern.permute.xlu0 %v1093_v10 }
 0x102   :  { %v207_v61 = vrot.slane %v206_v60, 1 }
 0x103   :  { %648 = vperm.xlu1 %1036, %v1186_v7  }
 0x104   :  { %v208_v62 = vadd.f32 %v207_v61, %v206_v60 }
 0x106   :  { %v209_v63 = vmul.f32 0.03125, %v208_v62 }
 0x107   :  { %1038 = vset.pattern.permute.xlu1 %v1092_v0 }
 0x108   :  { %v210_v2 = vadd.f32 1e-05, %v209_v63 }
 0x10a   :  { %1041 = vrsqrt.f32 %v210_v2 }
 0x117   :  { %v1042_v12 = vpop.eup %1041 }
 0x118   :  { %v214_v14 = vmul.f32 %v1042_v12, %v190_v44  ;;  %v215_v15 = vmul.f32 %v1042_v12, %v191_v45  ;;  %v213_v16 = vmul.f32 %v1042_v12, %v189_v43  ;;  %v212_v17 = vmul.f32 %v1042_v12, %v188_v42 }
 0x11a   :  { %v234_v19 = vmul.f32 %v226_v4, %v214_v14  ;;  %v235_v20 = vmul.f32 %v230_v6, %v215_v15  ;;  %v233_v21 = vmul.f32 %v222_v11, %v213_v16  ;;  %v232_v24 = vmul.f32 %v218_v18, %v212_v17 }
 0x11c   :  { %v255_v22 = vadd.f32 %v250_v9, %v235_v20  ;;  %v254_v23 = vadd.f32 %v246_v13, %v234_v19  ;;  %v253_v28 = vadd.f32 %v242_v25, %v233_v21  ;;  %v252_v30 = vadd.f32 %v238_v26, %v232_v24  ;;  %v434_v24 = vpop.permute.xlu1 %433 }
 0x11e   :  { %v259_v27 = vmax.f32 %v255_v22, 0.0  ;;  %v258_v29 = vmax.f32 %v254_v23, 0.0  ;;  %v257_v31 = vmax.f32 %v253_v28, 0.0  ;;  %v256_v32 = vmax.f32 %v252_v30, 0.0  ;;  %v430_v30 = vpop.permute.xlu0 %429 }
 0x120   :  { %960 = vmatprep.subr.mxu1 %v259_v27  ;;  %v454_v28 = vpop.permute.xlu1 %453 }
 0x121   :  { %961 = vmatpush3.msra.mxu1 %v259_v27 }
 0x122   :  { %962 = vmatprep.subr.mxu1 %v258_v29 }
 0x123   :  { %963 = vmatpush3.msra.mxu1 %v258_v29 }
 0x124   :  { %964 = vmatprep.subr.mxu1 %v257_v31  ;;  %v426_v29 = vpop.permute.xlu1 %425 }
 0x125   :  { %965 = vmatpush3.msra.mxu1 %v257_v31 }
 0x126   :  { %966 = vmatprep.subr.mxu1 %v256_v32 }
 0x127   :  { %967 = vmatpush3.msra.mxu1 %v256_v32 }
 0x128   :  { %969 = vmatmul.mubr.msk.f32.vlgmr.msra.gmra.mxu1 %vm280_vm1, %v261_v33  ;;  %v422_v31 = vpop.permute.xlu1 %421  ;;  %v450_v33 = vpop.permute.xlu0 %449 }
 0x129   :  { %971 = vmatprep.mubr.msk.f32.mxu1 %vm280_vm1, %v262_v34 }
 0x12c   :  { %972 = vmatmul.mubr.msk.f32.gmra.mxu1 %vm280_vm1, %v263_v35 }
 0x1e8   :  { %v970_v42 = vpop.f32.mrf.mxu1 }
 0x1e9   :  { %v365_v44 = vadd.f32 %v970_v42, %v270_v41  ;;  %v446_v41 = vpop.permute.xlu1 %445 }
 0x1ea   :  { %v359_v43 = vpop.f32.mrf.mxu1 }
 0x1eb   :  { %v360_v45 = vadd.f32 %v359_v43, %v266_v40  ;;  %v379_v5 = vsel %vm172_vm2, %v365_v44, 0.0 }
 0x1ec   :  { %v973_v46 = vpop.f32.mrf.mxu1 }
 0x1ed   :  { %v378_v8 = vsel %vm172_vm2, %v360_v45, 0.0  ;;  %v375_v49 = vadd.f32 %v973_v46, %v278_v48 }
 0x1ee   :  { %v369_v3 = vpop.f32.mrf.mxu1  ;;  %v380_v51 = vadd.f32 %v379_v5, %v378_v8 }
 0x1ef   :  { %v370_v50 = vadd.f32 %v369_v3, %v274_v47  ;;  %v383_v52 = vsel %vm172_vm2, %v375_v49, 0.0 }
 0x1f1   :  { %v381_v7 = vsel %vm172_vm2, %v370_v50, 0.0 }
 0x1f2   :  { %v382_v0 = vadd.f32 %v381_v7, %v380_v51  ;;  %v467_v51 = vld [vmem:[%s1329_s4 + $0x18] sm:$0xff]  ;;  %v806_v7 = vand.u32 2147483647, %v1155_v1  ;;  %v684_v1 = vld [vmem:[%s1332_s7 + $0x8] sm:$0xff] }
 0x1f4   :  { %v384_v53 = vadd.f32 %v383_v52, %v382_v0  ;;  %v681_v0 = vld [vmem:[%s1331_s6] sm:$0xff] }
 0x1f5   :  { %996 = vmatprep.mubr.msk.f32.mxu1 %vm280_vm1, %v681_v0  ;;  %v683_v52 = vld [vmem:[%s1332_s7] sm:$0xff] }
 0x1f6   :  { %v385_v54 = vrot.slane %v384_v53, 4  ;;  %687 = vperm.xlu1 %1038, %v683_v52   ;;  %788 = vperm.xlu0 %1039, %v683_v52  }
 0x1f8   :  { %v386_v55 = vadd.f32 %v385_v54, %v384_v53  ;;  %v1101_v53 = vmov 0.0   ;;  %v1103_v54 = vmov 1.0  }
 0x1fa   :  { %v387_v56 = vrot.slane %v386_v55, 2  ;;  %692 = vperm.xlu1 %1038, %v684_v1  }
 0x1fc   :  { %v388_v57 = vadd.f32 %v387_v56, %v386_v55  ;;  %v470_v55 = vpop.permute.xlu1 %469 }
 0x1fe   :  { %v389_v58 = vrot.slane %v388_v57, 1  ;;  %1040 = vset.pattern.permute.xlu1 %v1093_v10 }
 0x1ff   :  { %792 = vperm.xlu1 %1040, %v684_v1  }
 0x200   :  { %v390_v59 = vadd.f32 %v389_v58, %v388_v57  ;;  %v478_v57 = vpop.permute.xlu1 %477 }
 0x202   :  { %v391_v60 = vmul.f32 0.03125, %v390_v59 }
 0x204   :  { %v392_v61 = vsub.f32 %v360_v45, %v391_v60  ;;  %v393_v62 = vsub.f32 %v365_v44, %v391_v60  ;;  %v394_v63 = vsub.f32 %v370_v50, %v391_v60  ;;  %v395_v2 = vsub.f32 %v375_v49, %v391_v60  ;;  %v442_v45 = vpop.permute.xlu0 %441  ;;  %v465_v49 = vld [vmem:[%s1329_s4 + $0x8] sm:$0xff]  ;;  %v466_v50 = vld [vmem:[%s1329_s4 + $0x10] sm:$0xff] }
 0x206   :  { %v396_v4 = vmul.f32 %v392_v61, %v392_v61  ;;  %v397_v6 = vmul.f32 %v393_v62, %v393_v62  ;;  %v398_v9 = vmul.f32 %v394_v63, %v394_v63  ;;  %v399_v13 = vmul.f32 %v395_v2, %v395_v2 }
 0x208   :  { %v400_v11 = vsel %vm172_vm2, %v396_v4, 0.0  ;;  %v401_v12 = vsel %vm172_vm2, %v397_v6, 0.0  ;;  %v403_v15 = vsel %vm172_vm2, %v398_v9, 0.0  ;;  %v405_v17 = vsel %vm172_vm2, %v399_v13, 0.0  ;;  %v474_v56 = vpop.permute.xlu0 %473 }
 0x209   :  { %v402_v14 = vadd.f32 %v401_v12, %v400_v11 }
 0x20b   :  { %v404_v16 = vadd.f32 %v403_v15, %v402_v14 }
 0x20d   :  { %v406_v18 = vadd.f32 %v405_v17, %v404_v16 }
 0x20f   :  { %v407_v19 = vrot.slane %v406_v18, 4 }
 0x211   :  { %v408_v20 = vadd.f32 %v407_v19, %v406_v18 }
 0x213   :  { %v409_v21 = vrot.slane %v408_v20, 2 }
 0x215   :  { %v410_v22 = vadd.f32 %v409_v21, %v408_v20 }
 0x217   :  { %v411_v23 = vrot.slane %v410_v22, 1 }
 0x219   :  { %v412_v25 = vadd.f32 %v411_v23, %v410_v22 }
 0x21b   :  { %v413_v26 = vmul.f32 0.03125, %v412_v25 }
 0x21d   :  { %v414_v27 = vadd.f32 1e-05, %v413_v26 }
 0x21f   :  { %1043 = vrsqrt.f32 %v414_v27 }
 0x22c   :  { %v1044_v32 = vpop.eup %1043 }
 0x22d   :  { %v419_v34 = vmul.f32 %v1044_v32, %v395_v2  ;;  %v417_v35 = vmul.f32 %v1044_v32, %v393_v62  ;;  %v418_v36 = vmul.f32 %v1044_v32, %v394_v63  ;;  %v416_v37 = vmul.f32 %v1044_v32, %v392_v61  ;;  %v482_v2 = vpop.permute.xlu1 %481 }
 0x22f   :  { %v439_v38 = vmul.f32 %v434_v24, %v419_v34  ;;  %v437_v39 = vmul.f32 %v426_v29, %v417_v35  ;;  %v438_v40 = vmul.f32 %v430_v30, %v418_v36  ;;  %v436_v43 = vmul.f32 %v422_v31, %v416_v37 }
 0x231   :  { %v459_v42 = vadd.f32 %v454_v28, %v439_v38  ;;  %v458_v44 = vadd.f32 %v450_v33, %v438_v40  ;;  %v457_v47 = vadd.f32 %v446_v41, %v437_v39  ;;  %v456_v48 = vadd.f32 %v442_v45, %v436_v43 }
 0x233   :  { %v463_v46 = vmax.f32 %v459_v42, 0.0  ;;  %v462_v8 = vmax.f32 %v458_v44, 0.0  ;;  %v461_v3 = vmax.f32 %v457_v47, 0.0  ;;  %v460_v5 = vmax.f32 %v456_v48, 0.0  ;;  %v637_v47 = vpop.permute.xlu0 %636 }
 0x235   :  { %974 = vmatprep.subr.mxu0 %v463_v46 }
 0x236   :  { %975 = vmatpush3.msra.mxu0 %v463_v46  ;;  %v633_v46 = vpop.permute.xlu1 %632 }
 0x237   :  { %976 = vmatprep.subr.mxu0 %v462_v8  ;;  %v629_v48 = vpop.permute.xlu0 %628 }
 0x238   :  { %977 = vmatpush3.msra.mxu0 %v462_v8 }
 0x239   :  { %978 = vmatprep.subr.mxu0 %v461_v3 }
 0x23a   :  { %979 = vmatpush3.msra.mxu0 %v461_v3  ;;  %v657_v8 = vpop.permute.xlu1 %656 }
 0x23b   :  { %980 = vmatprep.subr.mxu0 %v460_v5  ;;  %v625_v0 = vpop.permute.xlu0 %624 }
 0x23c   :  { %981 = vmatpush3.msra.mxu0 %v460_v5 }
 0x23d   :  { %983 = vmatmul.mubr.msk.f32.vlgmr.msra.gmra.mxu0 %vm280_vm1, %v465_v49  ;;  %999 = vmatprep.subr.mxu0 %v1101_v53 }
 0x23e   :  { %985 = vmatprep.mubr.msk.f32.mxu0 %vm280_vm1, %v466_v50  ;;  %1000 = vmatpush3.xpose.msk.msra.mxu0 %vm71_vm0, %v806_v7  ;;  %v653_v5 = vpop.permute.xlu1 %652 }
 0x241   :  { %986 = vmatmul.mubr.msk.f32.gmra.mxu0 %vm280_vm1, %v467_v51 }
 0x242   :  { %1001 = vmatprep.mubr.msk.f32.mxu0 %vm1102_vm3, %v1101_v53 }
 0x245   :  { %1002 = vmatmul.mubr.msk.f32.vlgmr.msra.gmra.mxu0 %vm71_vm0, %v1103_v54 }
 0x2fd   :  { %v984_v58 = vpop.f32.mrf.mxu0 }
 0x2fe   :  { %v568_v60 = vadd.f32 %v984_v58, %v474_v56  ;;  %v649_v58 = vpop.permute.xlu1 %648 }
 0x2ff   :  { %v562_v59 = vpop.f32.mrf.mxu0 }
 0x300   :  { %v563_v61 = vadd.f32 %v562_v59, %v470_v55  ;;  %v582_v6 = vsel %vm172_vm2, %v568_v60, 0.0  ;;  %v645_v59 = vpop.permute.xlu0 %644 }
 0x301   :  { %v987_v62 = vpop.f32.mrf.mxu0 }
 0x302   :  { %v581_v63 = vsel %vm172_vm2, %v563_v61, 0.0  ;;  %v578_v9 = vadd.f32 %v987_v62, %v482_v2 }
 0x303   :  { %v572_v4 = vpop.f32.mrf.mxu0  ;;  %v583_v12 = vadd.f32 %v582_v6, %v581_v63  ;;  %v682_v6 = vld [vmem:[%s1331_s6 + $0x8] sm:$0xff] }
 0x304   :  { %v573_v11 = vadd.f32 %v572_v4, %v478_v57  ;;  %v586_v14 = vsel %vm172_vm2, %v578_v9, 0.0 }
 0x306   :  { %v584_v10 = vsel %vm172_vm2, %v573_v11, 0.0 }
 0x307   :  { %v585_v13 = vadd.f32 %v584_v10, %v583_v12  ;;  %v668_v12 = vlaneseq  ;;  %v688_v10 = vpop.permute.xlu1 %687 }
 0x309   :  { %v587_v15 = vadd.f32 %v586_v14, %v585_v13  ;;  %v669_v13 = vshrl.u32 %v668_v12, 7 }
 0x30b   :  { %v588_v16 = vrot.slane %v587_v15, 4  ;;  %v670_v14 = vadd.s32 8, %v669_v13 }
 0x30d   :  { %v589_v17 = vadd.f32 %v588_v16, %v587_v15  ;;  %v693_v15 = vpop.permute.xlu1 %692  ;;  %v916_v16 = vld [vmem:[%s1326_s1] ss:$0 sm:$0xff]  ;;  %s1104_s1 = smov [#allocation5]  }
 0x30e   :  { %vm676_vm4 = vcmp.eq.s32.totalorder %v670_v14, %v916_v16  ;;  %vm675_vm5 = vcmp.eq.s32.totalorder %v669_v13, %v916_v16  ;;  %s894_s6 = sshll.u32 %s1104_s1, 4  ;;  %s895_s6 = int_to_ptr.vmem [resolvable:$true] %s894_s6 }
 0x30f   :  { %v590_v18 = vrot.slane %v589_v17, 2  ;;  %s1067_s23 = scalar_lea.vmem %s895_s6, 16  ;;  %s1071_s24 = scalar_lea.vmem %s895_s6, 32 }
 0x310   :  { %p1068_p5 = scmp.ne.s32.totalorder %s895_s6, %s1067_s23  ;;  %p1072_p6 = scmp.lt.s32.totalorder %s895_s6, %s895_s6 }
 0x311   :  { %v591_v19 = vadd.f32 %v590_v18, %v589_v17  ;;  %v918_v17 = vsel %vm676_vm4, 1.0, %v1101_v53  ;;  %v793_v18 = vpop.permute.xlu1 %792  ;;  %p1073_p7 = scmp.lt.s32.totalorder %s1071_s24, %s1067_s23 }
 0x313   :  { %v592_v20 = vrot.slane %v591_v19, 1  ;;  %p1074_p8 = por %p1073_p7, %p1072_p6 }
 0x315   :  { %v593_v21 = vadd.f32 %v592_v20, %v591_v19  ;;  %v917_v19 = vsel %vm675_vm5, 1.0, %v1101_v53  ;;  %v789_v20 = vpop.permute.xlu0 %788  ;;  %p1075_p9 = pnand %p1074_p8, %p1068_p5 }
 0x317   :  { %v594_v22 = vmul.f32 0.03125, %v593_v21  ;;  %v796_v21 = vmul.f32 %v918_v17, %v793_v18 }
 0x319   :  { %v595_v23 = vsub.f32 %v563_v61, %v594_v22  ;;  %v596_v24 = vsub.f32 %v568_v60, %v594_v22  ;;  %v597_v25 = vsub.f32 %v573_v11, %v594_v22  ;;  %v598_v26 = vsub.f32 %v578_v9, %v594_v22  ;;  %v879_v9 = vpop.f32.mrf.mxu0 }
 0x31a   :  { %v795_v22 = vmul.f32 %v917_v19, %v789_v20  ;;  %vm883_vm6 = vcmp.eq.f32.partialorder %v879_v9, 0.0 }
 0x31b   :  { %v599_v27 = vmul.f32 %v595_v23, %v595_v23  ;;  %v600_v28 = vmul.f32 %v596_v24, %v596_v24  ;;  %v601_v29 = vmul.f32 %v597_v25, %v597_v25  ;;  %v602_v30 = vmul.f32 %v598_v26, %v598_v26  ;;  %v1003_v11 = vpop.f32.mrf.mxu0 }
 0x31d   :  { %v603_v31 = vsel %vm172_vm2, %v599_v27, 0.0  ;;  %v604_v32 = vsel %vm172_vm2, %v600_v28, 0.0  ;;  %v606_v34 = vsel %vm172_vm2, %v601_v29, 0.0  ;;  %v608_v36 = vsel %vm172_vm2, %v602_v30, 0.0 }
 0x31e   :  { %v605_v33 = vadd.f32 %v604_v32, %v603_v31 }
 0x320   :  { %v607_v35 = vadd.f32 %v606_v34, %v605_v33 }
 0x322   :  { %v609_v37 = vadd.f32 %v608_v36, %v607_v35 }
 0x324   :  { %v610_v38 = vrot.slane %v609_v37, 4 }
 0x326   :  { %v611_v39 = vadd.f32 %v610_v38, %v609_v37 }
 0x328   :  { %v612_v40 = vrot.slane %v611_v39, 2 }
 0x32a   :  { %v613_v41 = vadd.f32 %v612_v40, %v611_v39 }
 0x32c   :  { %v614_v42 = vrot.slane %v613_v41, 1 }
 0x32e   :  { %v615_v43 = vadd.f32 %v614_v42, %v613_v41 }
 0x330   :  { %v616_v44 = vmul.f32 0.03125, %v615_v43 }
 0x332   :  { %v617_v45 = vadd.f32 1e-05, %v616_v44 }
 0x334   :  { %1045 = vrsqrt.f32 %v617_v45 }
 0x341   :  { %v1046_v3 = vpop.eup %1045 }
 0x342   :  { %v621_v49 = vmul.f32 %v1046_v3, %v597_v25  ;;  %v622_v50 = vmul.f32 %v1046_v3, %v598_v26  ;;  %v620_v51 = vmul.f32 %v1046_v3, %v596_v24  ;;  %v619_v7 = vmul.f32 %v1046_v3, %v595_v23 }
 0x343   :  { %v798_v23 = vsel %vm172_vm2, %v796_v21, 0.0  ;;  %v797_v24 = vsel %vm172_vm2, %v795_v22, 0.0 }
 0x344   :  { %v641_v52 = vmul.f32 %v633_v46, %v621_v49  ;;  %v642_v1 = vmul.f32 %v637_v47, %v622_v50  ;;  %v640_v54 = vmul.f32 %v629_v48, %v620_v51  ;;  %v639_v57 = vmul.f32 %v625_v0, %v619_v7 }
 0x345   :  { %v799_v25 = vadd.f32 %v798_v23, %v797_v24 }
 0x346   :  { %v662_v55 = vadd.f32 %v657_v8, %v642_v1  ;;  %v661_v56 = vadd.f32 %v653_v5, %v641_v52  ;;  %v660_v61 = vadd.f32 %v649_v58, %v640_v54  ;;  %v659_v63 = vadd.f32 %v645_v59, %v639_v57 }
 0x347   :  { %v800_v26 = vrot.slane %v799_v25, 4 }
 0x348   :  { %v666_v60 = vmax.f32 %v662_v55, 0.0  ;;  %v665_v62 = vmax.f32 %v661_v56, 0.0  ;;  %v664_v2 = vmax.f32 %v660_v61, 0.0  ;;  %v663_v4 = vmax.f32 %v659_v63, 0.0 }
 0x349   :  { %v801_v32 = vadd.f32 %v800_v26, %v799_v25 }
 0x34a   :  { %988 = vmatprep.subr.mxu1 %v666_v60 }
 0x34b   :  { %989 = vmatpush3.msra.mxu1 %v666_v60  ;;  %v802_v35 = vrot.slane %v801_v32, 2 }
 0x34c   :  { %990 = vmatprep.subr.mxu1 %v665_v62 }
 0x34d   :  { %991 = vmatpush3.msra.mxu1 %v665_v62  ;;  %v803_v38 = vadd.f32 %v802_v35, %v801_v32 }
 0x34e   :  { %992 = vmatprep.subr.mxu1 %v664_v2 }
 0x34f   :  { %993 = vmatpush3.msra.mxu1 %v664_v2  ;;  %v804_v42 = vrot.slane %v803_v38, 1 }
 0x350   :  { %994 = vmatprep.subr.mxu1 %v663_v4 }
 0x351   :  { %995 = vmatpush3.msra.mxu1 %v663_v4  ;;  %v805_v45 = vadd.f32 %v804_v42, %v803_v38 }
 0x352   :  { %997 = vmatmul.mubr.msk.f32.vlgmr.msra.gmra.mxu1 %vm280_vm1, %v682_v6 }
 0x412   :  { %v998_v27 = vpop.f32.mrf.mxu1 }
 0x413   :  { %v773_v28 = vadd.f32 %v998_v27, %v693_v15 }
 0x414   :  { %v767_v29 = vpop.f32.mrf.mxu1 }
 0x415   :  { %v777_v30 = vmul.f32 %v918_v17, %v773_v28  ;;  %v768_v31 = vadd.f32 %v767_v29, %v688_v10 }
 0x417   :  { %v776_v33 = vmul.f32 %v917_v19, %v768_v31  ;;  %v779_v34 = vsel %vm172_vm2, %v777_v30, 0.0 }
 0x419   :  { %v778_v53 = vsel %vm172_vm2, %v776_v33, 0.0 }
 0x41a   :  { %v780_v36 = vadd.f32 %v779_v34, %v778_v53 }
 0x41c   :  { %v781_v37 = vrot.slane %v780_v36, 4 }
 0x41e   :  { %v782_v39 = vadd.f32 %v781_v37, %v780_v36 }
 0x420   :  { %v783_v40 = vrot.slane %v782_v39, 2 }
 0x422   :  { %v784_v41 = vadd.f32 %v783_v40, %v782_v39 }
 0x424   :  { %v785_v43 = vrot.slane %v784_v41, 1 }
 0x426   :  { %v786_v44 = vadd.f32 %v785_v43, %v784_v41 }
 0x428   :  { %v884_v46 = vsel %vm883_vm6, %v805_v45, %v786_v44 }
 0x429   :  { %v885_v47 = vmul.f32 0.5, %v884_v46 }
 0x42b   :  { %887 = vst.msk [vmem:[#allocation5] sm:$0x1] %vm886_vm7, %v885_v47 }
 0x42c   :  { %1078 = shalt.err (!%p1075_p9)
}
 0x42d   :  { %897 = dma.vmem_to_hbm [thread:$0]  %s895_s6, 16, %s1333_s8, [#allocation4]  }
 0x42e   :  { %1089 = dma.done.wait [#allocation4], 16  }
 0x42f   :  { %1090 = vsyncadd [#allocation4], 4294967280 }
 0x430   :  { %901 = vsyncpa [#allocation3], 1 }
 0x431   :  { %902 = vsyncpa [#allocation4], 1 }

</bundles_post_ra>
